<compile_context>
chip_gen: v5e
topology: v5e:2x2
jax: 0.10.0
libtpu: 0.0.40
codegen_flags: <defaults>
</compile_context>

<pallas_src>
import math
import functools

import jax
import jax.numpy as jnp
from jax import lax
from jax.experimental import pallas as pl
from jax.experimental.pallas import tpu as pltpu


def _round_up(x, m):
    return ((x + m - 1) // m) * m


def _gelu_exact(x):
    # PyTorch nn.GELU() default = exact erf-based GELU (computed in f32 here).
    return 0.5 * x * (1.0 + lax.erf(x * 0.7071067811865476))


def _mlp_kernel(x_ref, w1_ref, b1_ref, w2_ref, b2_ref, o_ref, acc_ref):
    k = pl.program_id(1)

    @pl.when(k == 0)
    def _init():
        # Fold the fc2 bias into the accumulator init (one broadcast, once).
        acc_ref[...] = jnp.broadcast_to(
            b2_ref[...].astype(jnp.float32), acc_ref.shape)

    # fc1 slice: (tm, Cin) @ (Cin, th) -> (tm, th), f32 accumulate on the MXU.
    h = jnp.dot(x_ref[...], w1_ref[...], preferred_element_type=jnp.float32)
    h = h + b1_ref[...].astype(jnp.float32)          # broadcast (1, th)
    h = _gelu_exact(h)
    # Dropout(p=0.0) is the identity -> nothing to do.

    # fc2 partial: (tm, th) @ (th, Cout) -> accumulate into f32 scratch.
    acc_ref[...] += jnp.dot(h.astype(w2_ref.dtype), w2_ref[...],
                            preferred_element_type=jnp.float32)

    @pl.when(k == pl.num_programs(1) - 1)
    def _finalize():
        o_ref[...] = acc_ref[...].astype(o_ref.dtype)


@functools.partial(jax.jit, static_argnames=("block_m", "block_h"))
def mlp_forward(x, w1, b1, w2, b2, *, block_m=256, block_h=512):
    """x: (B, N, Cin); w1: (Cin, H); b1: (H,); w2: (H, Cout); b2: (Cout,)."""
    B, N, Cin = x.shape
    H = w1.shape[1]
    Cout = w2.shape[1]
    M = B * N

    # ---- Tile sizes / lane-aligned padding (static, from shapes). ----------
    Cin_p = _round_up(Cin, 128)
    Cout_p = _round_up(Cout, 128)

    tm = min(block_m, _round_up(M, 8))
    tm = _round_up(tm, 8)
    M_p = _round_up(M, tm)

    H_p = _round_up(H, 128)
    th = _round_up(min(block_h, H_p), 128)
    H_p = _round_up(H_p, th)          # guarantee th | H_p (no partial H tiles)

    # ---- Zero-pad operands (padding contributes exactly 0). ---------------
    x2d = x.reshape(M, Cin)
    x_p = jnp.pad(x2d, ((0, M_p - M), (0, Cin_p - Cin)))
    w1_p = jnp.pad(w1, ((0, Cin_p - Cin), (0, H_p - H)))
    b1_p = jnp.pad(b1, (0, H_p - H)).reshape(1, H_p)
    w2_p = jnp.pad(w2, ((0, H_p - H), (0, Cout_p - Cout)))
    b2_p = jnp.pad(b2, (0, Cout_p - Cout)).reshape(1, Cout_p)

    grid = (M_p // tm, H_p // th)     # (parallel rows, arbitrary H-reduction)

    # ---- VMEM budget: actual tile footprint (double-buffered) + headroom. -
    act_bytes = jnp.dtype(x.dtype).itemsize
    w_bytes = jnp.dtype(w1.dtype).itemsize
    est = 2 * (tm * Cin_p + tm * Cout_p) * act_bytes          # x, out tiles
    est += 2 * (Cin_p * th + th + th * Cout_p + Cout_p) * w_bytes
    est += tm * Cout_p * 4                                    # f32 accumulator
    vmem_limit = int(min(max(2 * est, 32 * 1024 * 1024), 64 * 1024 * 1024))

    out2d = pl.pallas_call(
        _mlp_kernel,
        out_shape=jax.ShapeDtypeStruct((M_p, Cout_p), x.dtype),
        grid_spec=pltpu.PrefetchScalarGridSpec(
            num_scalar_prefetch=0,
            grid=grid,
            in_specs=[
                pl.BlockSpec((tm, Cin_p), lambda i, k: (i, 0)),   # x rows
                pl.BlockSpec((Cin_p, th), lambda i, k: (0, k)),   # fc1 w slice
                pl.BlockSpec((1, th), lambda i, k: (0, k)),       # fc1 b slice
                pl.BlockSpec((th, Cout_p), lambda i, k: (k, 0)),  # fc2 w slice
                pl.BlockSpec((1, Cout_p), lambda i, k: (0, 0)),   # fc2 bias
            ],
            out_specs=pl.BlockSpec((tm, Cout_p), lambda i, k: (i, 0)),
            scratch_shapes=[pltpu.VMEM((tm, Cout_p), jnp.float32)],
        ),
        compiler_params=pltpu.CompilerParams(
            dimension_semantics=("parallel", "arbitrary"),
            vmem_limit_bytes=vmem_limit,
        ),
    )(x_p, w1_p, b1_p, w2_p, b2_p)

    return out2d[:M, :Cout].reshape(B, N, Cout)


def _reference(x, w1, b1, w2, b2):
    h = jnp.einsum("bnc,ch->bnh", x, w1) + b1
    h = 0.5 * h * (1.0 + lax.erf(h / jnp.sqrt(2.0)))
    return jnp.einsum("bnh,ho->bno", h, w2) + b2


if __name__ == "__main__":
    # Small shapes consistent with the module: tokens (B, N, C), hidden = 2*C.
    B, N, Cin = 2, 8, 32
    H = 64
    Cout = Cin

    key = jax.random.PRNGKey(0)
    kx, kw1, kb1, kw2, kb2 = jax.random.split(key, 5)

    x = jax.random.normal(kx, (B, N, Cin), dtype=jnp.float32)
    # Deterministic synthetic parameters (nn.Linear-ish scale).
    w1 = jax.random.normal(kw1, (Cin, H), dtype=jnp.float32) / math.sqrt(Cin)
    b1 = jax.random.normal(kb1, (H,), dtype=jnp.float32) * 0.01
    w2 = jax.random.normal(kw2, (H, Cout), dtype=jnp.float32) / math.sqrt(H)
    b2 = jax.random.normal(kb2, (Cout,), dtype=jnp.float32) * 0.01

    out = mlp_forward(x, w1, b1, w2, b2)
    jax.block_until_ready(out)

    ref = _reference(x, w1, b1, w2, b2)
    assert out.shape == (B, N, Cout)
    assert jnp.allclose(out, ref, atol=1e-4, rtol=1e-4), "mismatch vs reference"

    print("KERNEL_OK")
</pallas_src>

<mosaic_0001>
module attributes {stable_mosaic.version = 11 : i64} {
  func.func @_mlp_kernel(%arg0: i32, %arg1: i32, %arg2: memref<16x128xf32, #tpu.memory_space<vmem>>, %arg3: memref<128x128xf32, #tpu.memory_space<vmem>>, %arg4: memref<1x128xf32, #tpu.memory_space<vmem>>, %arg5: memref<128x128xf32, #tpu.memory_space<vmem>>, %arg6: memref<1x128xf32, #tpu.memory_space<vmem>>, %arg7: memref<16x128xf32, #tpu.memory_space<vmem>>, %arg8: memref<16x128xf32, #tpu.memory_space<vmem>>) attributes {dimension_semantics = [#tpu.dimension_semantics<parallel>, #tpu.dimension_semantics<arbitrary>], iteration_bounds = array<i64: 1, 1>, scalar_prefetch = 0 : i64, scratch_operands = 1 : i64, tpu.core_type = #tpu.core_type<tc>, window_params = [{transform_indices = @transform_0, window_bounds = array<i64: 16, 128>}, {transform_indices = @transform_1, window_bounds = array<i64: 128, 128>}, {transform_indices = @transform_2, window_bounds = array<i64: 1, 128>}, {transform_indices = @transform_3, window_bounds = array<i64: 128, 128>}, {pipeline_mode = #tpu.pipeline_mode<synchronous>, transform_indices = @transform_4, window_bounds = array<i64: 1, 128>}, {transform_indices = @transform_5, window_bounds = array<i64: 16, 128>}]} {
    %c0_i32 = arith.constant 0 : i32
    %0 = arith.cmpi eq, %arg1, %c0_i32 : i32
    %1 = arith.extui %0 : i1 to i32
    %c0_i32_0 = arith.constant 0 : i32
    %2 = arith.cmpi ne, %1, %c0_i32_0 : i32
    scf.if %2 {
      %c0_18 = arith.constant 0 : index
      %c0_19 = arith.constant 0 : index
      %25 = vector.load %arg6[%c0_18, %c0_19] : memref<1x128xf32, #tpu.memory_space<vmem>>, vector<1x128xf32>
      %26 = vector.shape_cast %25 : vector<1x128xf32> to vector<1x128xf32>
      %27 = vector.broadcast %26 : vector<1x128xf32> to vector<16x128xf32>
      %c0_20 = arith.constant 0 : index
      %c0_21 = arith.constant 0 : index
      %28 = vector.load %arg8[%c0_20, %c0_21] : memref<16x128xf32, #tpu.memory_space<vmem>>, vector<16x128xf32>
      tpu.vector_store %arg8[%c0_20, %c0_21], %27 {strides = array<i32>} : memref<16x128xf32, #tpu.memory_space<vmem>>, vector<16x128xf32>,
    } else {
    }
    %c0 = arith.constant 0 : index
    %c0_1 = arith.constant 0 : index
    %3 = vector.load %arg2[%c0, %c0_1] : memref<16x128xf32, #tpu.memory_space<vmem>>, vector<16x128xf32>
    %c0_2 = arith.constant 0 : index
    %c0_3 = arith.constant 0 : index
    %4 = vector.load %arg3[%c0_2, %c0_3] : memref<128x128xf32, #tpu.memory_space<vmem>>, vector<128x128xf32>
    %cst = arith.constant dense<0.000000e+00> : vector<16x128xf32>
    %5 = tpu.matmul %3, %4, %cst {dimension_numbers = #tpu.dot_dimension_numbers<[1], [0], [0], [1], [0, 0, 1, 1], [], []>} : vector<16x128xf32>, vector<128x128xf32>, vector<16x128xf32> -> vector<16x128xf32>
    %c0_4 = arith.constant 0 : index
    %c0_5 = arith.constant 0 : index
    %6 = vector.load %arg4[%c0_4, %c0_5] : memref<1x128xf32, #tpu.memory_space<vmem>>, vector<1x128xf32>
    %7 = vector.broadcast %6 : vector<1x128xf32> to vector<16x128xf32>
    %8 = arith.addf %5, %7 : vector<16x128xf32>
    %cst_6 = arith.constant 5.000000e-01 : f32
    %9 = vector.broadcast %cst_6 : f32 to vector<16x128xf32>
    %10 = arith.mulf %9, %8 : vector<16x128xf32>
    %cst_7 = arith.constant 0.707106769 : f32
    %11 = vector.broadcast %cst_7 : f32 to vector<16x128xf32>
    %12 = arith.mulf %8, %11 : vector<16x128xf32>
    %13 = math.erf %12 : vector<16x128xf32>
    %cst_8 = arith.constant 1.000000e+00 : f32
    %14 = vector.broadcast %cst_8 : f32 to vector<16x128xf32>
    %15 = arith.addf %14, %13 : vector<16x128xf32>
    %16 = arith.mulf %10, %15 : vector<16x128xf32>
    %c0_9 = arith.constant 0 : index
    %c0_10 = arith.constant 0 : index
    %17 = vector.load %arg8[%c0_9, %c0_10] : memref<16x128xf32, #tpu.memory_space<vmem>>, vector<16x128xf32>
    %c0_11 = arith.constant 0 : index
    %c0_12 = arith.constant 0 : index
    %18 = vector.load %arg5[%c0_11, %c0_12] : memref<128x128xf32, #tpu.memory_space<vmem>>, vector<128x128xf32>
    %cst_13 = arith.constant dense<0.000000e+00> : vector<16x128xf32>
    %19 = tpu.matmul %16, %18, %cst_13 {dimension_numbers = #tpu.dot_dimension_numbers<[1], [0], [0], [1], [0, 0, 1, 1], [], []>} : vector<16x128xf32>, vector<128x128xf32>, vector<16x128xf32> -> vector<16x128xf32>
    %20 = arith.addf %17, %19 : vector<16x128xf32>
    %c0_14 = arith.constant 0 : index
    %c0_15 = arith.constant 0 : index
    %21 = vector.load %arg8[%c0_14, %c0_15] : memref<16x128xf32, #tpu.memory_space<vmem>>, vector<16x128xf32>
    tpu.vector_store %arg8[%c0_14, %c0_15], %20 {strides = array<i32>} : memref<16x128xf32, #tpu.memory_space<vmem>>, vector<16x128xf32>,
    %c0_i32_16 = arith.constant 0 : i32
    %22 = arith.cmpi eq, %arg1, %c0_i32_16 : i32
    %23 = arith.extui %22 : i1 to i32
    %c0_i32_17 = arith.constant 0 : i32
    %24 = arith.cmpi ne, %23, %c0_i32_17 : i32
    scf.if %24 {
      %c0_18 = arith.constant 0 : index
      %c0_19 = arith.constant 0 : index
      %25 = vector.load %arg8[%c0_18, %c0_19] : memref<16x128xf32, #tpu.memory_space<vmem>>, vector<16x128xf32>
      %c0_20 = arith.constant 0 : index
      %c0_21 = arith.constant 0 : index
      %26 = vector.load %arg7[%c0_20, %c0_21] : memref<16x128xf32, #tpu.memory_space<vmem>>, vector<16x128xf32>
      tpu.vector_store %arg7[%c0_20, %c0_21], %25 {strides = array<i32>} : memref<16x128xf32, #tpu.memory_space<vmem>>, vector<16x128xf32>,
    } else {
    }
    return
  }
  func.func @transform_0(%arg0: i32, %arg1: i32) -> (i32, i32) {
    %c0_i32 = arith.constant 0 : i32
    %c0_i32_0 = arith.constant 0 : i32
    return %arg0, %c0_i32 : i32, i32
  }
  func.func @transform_1(%arg0: i32, %arg1: i32) -> (i32, i32) {
    %c0_i32 = arith.constant 0 : i32
    %c0_i32_0 = arith.constant 0 : i32
    return %c0_i32, %arg1 : i32, i32
  }
  func.func @transform_2(%arg0: i32, %arg1: i32) -> (i32, i32) {
    %c0_i32 = arith.constant 0 : i32
    %c0_i32_0 = arith.constant 0 : i32
    return %c0_i32, %arg1 : i32, i32
  }
  func.func @transform_3(%arg0: i32, %arg1: i32) -> (i32, i32) {
    %c0_i32 = arith.constant 0 : i32
    %c0_i32_0 = arith.constant 0 : i32
    return %arg1, %c0_i32 : i32, i32
  }
  func.func @transform_4(%arg0: i32, %arg1: i32) -> (i32, i32) {
    %c0_i32 = arith.constant 0 : i32
    %c0_i32_0 = arith.constant 0 : i32
    %c0_i32_1 = arith.constant 0 : i32
    return %c0_i32, %c0_i32_0 : i32, i32
  }
  func.func @transform_5(%arg0: i32, %arg1: i32) -> (i32, i32) {
    %c0_i32 = arith.constant 0 : i32
    %c0_i32_0 = arith.constant 0 : i32
    return %arg0, %c0_i32 : i32, i32
  }
}

</mosaic_0001>

<bundles_post_ra>
// kernel: mlp_forward.1
= control target key start
LH: loop header
LB: loop body
LE: loop exit
PB: predicated region body
PF: predicated region fallthrough
CT: control target
= control target key end

     0   :  { %s433_s1 = inlined_call_operand.vmem [shape: f32[128,128], index: 1, kind: input, shape index: {}]   ;;  %s434_s2 = inlined_call_operand.vmem [shape: f32[1,128], index: 2, kind: input, shape index: {}]   ;;  %s435_s0 = inlined_call_operand.vmem [shape: f32[16,128], index: 0, kind: input, shape index: {}]   ;;  %s436_s4 = inlined_call_operand.vmem [shape: f32[1,128], index: 4, kind: input, shape index: {}]   ;;  %s437_s3 = inlined_call_operand.vmem [shape: f32[128,128], index: 3, kind: input, shape index: {}]   ;;  %s438_s5 = inlined_call_operand.vmem [shape: f32[16,128], index: 5, kind: output, shape index: {}]  }
   0x1   :  { %v47_v0 = vld [vmem:[%s433_s1 + $0x78] sm:$0xff]  ;;  %v46_v1 = vld [vmem:[%s433_s1 + $0x70] sm:$0xff]  ;;  %v45_v2 = vld [vmem:[%s433_s1 + $0x68] sm:$0xff] }
   0x2   :  { %52 = vmatpush.msra.mxu0 %v47_v0  ;;  %221 = vmatpush.msra.mxu2 %v47_v0  ;;  %v44_v3 = vld [vmem:[%s433_s1 + $0x60] sm:$0xff]  ;;  %v43_v4 = vld [vmem:[%s433_s1 + $0x58] sm:$0xff]  ;;  %v42_v5 = vld [vmem:[%s433_s1 + $0x50] sm:$0xff] }
   0x3   :  { %v41_v6 = vld [vmem:[%s433_s1 + $0x48] sm:$0xff]  ;;  %v40_v7 = vld [vmem:[%s433_s1 + $0x40] sm:$0xff]  ;;  %v39_v8 = vld [vmem:[%s433_s1 + $0x38] sm:$0xff] }
   0x4   :  { %53 = vmatpush.msra.mxu0 %v46_v1  ;;  %222 = vmatpush.msra.mxu2 %v46_v1  ;;  %v38_v9 = vld [vmem:[%s433_s1 + $0x30] sm:$0xff]  ;;  %v37_v10 = vld [vmem:[%s433_s1 + $0x28] sm:$0xff]  ;;  %v36_v11 = vld [vmem:[%s433_s1 + $0x20] sm:$0xff] }
   0x5   :  { %v35_v12 = vld [vmem:[%s433_s1 + $0x18] sm:$0xff]  ;;  %v34_v13 = vld [vmem:[%s433_s1 + $0x10] sm:$0xff]  ;;  %v33_v14 = vld [vmem:[%s433_s1 + $0x8] sm:$0xff] }
   0x6   :  { %54 = vmatpush.msra.mxu0 %v45_v2  ;;  %223 = vmatpush.msra.mxu2 %v45_v2  ;;  %v32_v15 = vld [vmem:[%s433_s1] sm:$0xff]  ;;  %v31_v17 = vld [vmem:[%s435_s0 + $0x8] sm:$0xff]  ;;  %v180_v18 = vld [vmem:[%s437_s3 + $0x78] sm:$0xff] }
   0x7   :  { %v30_v16 = vld [vmem:[%s435_s0] sm:$0xff]  ;;  %181 = vmatpush.msra.mxu1 %v180_v18  ;;  %237 = vmatpush.msra.mxu3 %v180_v18  ;;  %v179_v19 = vld [vmem:[%s437_s3 + $0x70] sm:$0xff]  ;;  %v178_v20 = vld [vmem:[%s437_s3 + $0x68] sm:$0xff] }
   0x8   :  { %55 = vmatpush.msra.mxu0 %v44_v3  ;;  %224 = vmatpush.msra.mxu2 %v44_v3  ;;  %v177_v21 = vld [vmem:[%s437_s3 + $0x60] sm:$0xff]  ;;  %v176_v23 = vld [vmem:[%s437_s3 + $0x58] sm:$0xff]  ;;  %v175_v25 = vld [vmem:[%s437_s3 + $0x50] sm:$0xff] }
   0x9   :  { %182 = vmatpush.msra.mxu1 %v179_v19  ;;  %238 = vmatpush.msra.mxu3 %v179_v19  ;;  %v253_v22 = vld [vmem:[%s434_s2] ss:$0 sm:$0xff]  ;;  %v174_v27 = vld [vmem:[%s437_s3 + $0x48] sm:$0xff]  ;;  %v172_v30 = vld [vmem:[%s437_s3 + $0x38] sm:$0xff] }
   0xa   :  { %56 = vmatpush.msra.mxu0 %v43_v4  ;;  %225 = vmatpush.msra.mxu2 %v43_v4  ;;  %v173_v29 = vld [vmem:[%s437_s3 + $0x40] sm:$0xff]  ;;  %v171_v33 = vld [vmem:[%s437_s3 + $0x30] sm:$0xff]  ;;  %v170_v36 = vld [vmem:[%s437_s3 + $0x28] sm:$0xff] }
   0xb   :  { %183 = vmatpush.msra.mxu1 %v178_v20  ;;  %239 = vmatpush.msra.mxu3 %v178_v20  ;;  %v169_v39 = vld [vmem:[%s437_s3 + $0x20] sm:$0xff]  ;;  %v168_v43 = vld [vmem:[%s437_s3 + $0x18] sm:$0xff]  ;;  %v167_v47 = vld [vmem:[%s437_s3 + $0x10] sm:$0xff] }
   0xc   :  { %57 = vmatpush.msra.mxu0 %v42_v5  ;;  %226 = vmatpush.msra.mxu2 %v42_v5  ;;  %v166_v52 = vld [vmem:[%s437_s3 + $0x8] sm:$0xff]  ;;  %v165_v56 = vld [vmem:[%s437_s3] sm:$0xff] }
   0xd   :  { %184 = vmatpush.msra.mxu1 %v177_v21  ;;  %240 = vmatpush.msra.mxu3 %v177_v21 }
   0xe   :  { %58 = vmatpush.msra.mxu0 %v41_v6  ;;  %227 = vmatpush.msra.mxu2 %v41_v6 }
   0xf   :  { %185 = vmatpush.msra.mxu1 %v176_v23  ;;  %241 = vmatpush.msra.mxu3 %v176_v23 }
  0x10   :  { %59 = vmatpush.msra.mxu0 %v40_v7  ;;  %228 = vmatpush.msra.mxu2 %v40_v7 }
  0x11   :  { %186 = vmatpush.msra.mxu1 %v175_v25  ;;  %242 = vmatpush.msra.mxu3 %v175_v25 }
  0x12   :  { %60 = vmatpush.msra.mxu0 %v39_v8  ;;  %229 = vmatpush.msra.mxu2 %v39_v8 }
  0x13   :  { %187 = vmatpush.msra.mxu1 %v174_v27  ;;  %243 = vmatpush.msra.mxu3 %v174_v27 }
  0x14   :  { %61 = vmatpush.msra.mxu0 %v38_v9  ;;  %230 = vmatpush.msra.mxu2 %v38_v9 }
  0x15   :  { %188 = vmatpush.msra.mxu1 %v173_v29  ;;  %244 = vmatpush.msra.mxu3 %v173_v29 }
  0x16   :  { %62 = vmatpush.msra.mxu0 %v37_v10  ;;  %231 = vmatpush.msra.mxu2 %v37_v10 }
  0x17   :  { %189 = vmatpush.msra.mxu1 %v172_v30  ;;  %245 = vmatpush.msra.mxu3 %v172_v30 }
  0x18   :  { %63 = vmatpush.msra.mxu0 %v36_v11  ;;  %232 = vmatpush.msra.mxu2 %v36_v11 }
  0x19   :  { %190 = vmatpush.msra.mxu1 %v171_v33  ;;  %246 = vmatpush.msra.mxu3 %v171_v33 }
  0x1a   :  { %64 = vmatpush.msra.mxu0 %v35_v12  ;;  %233 = vmatpush.msra.mxu2 %v35_v12 }
  0x1b   :  { %191 = vmatpush.msra.mxu1 %v170_v36  ;;  %247 = vmatpush.msra.mxu3 %v170_v36 }
  0x1c   :  { %65 = vmatpush.msra.mxu0 %v34_v13  ;;  %234 = vmatpush.msra.mxu2 %v34_v13 }
  0x1d   :  { %192 = vmatpush.msra.mxu1 %v169_v39  ;;  %248 = vmatpush.msra.mxu3 %v169_v39 }
  0x1e   :  { %66 = vmatpush.msra.mxu0 %v33_v14  ;;  %235 = vmatpush.msra.mxu2 %v33_v14 }
  0x1f   :  { %193 = vmatpush.msra.mxu1 %v168_v43  ;;  %249 = vmatpush.msra.mxu3 %v168_v43 }
  0x20   :  { %67 = vmatpush.msra.mxu0 %v32_v15  ;;  %236 = vmatpush.msra.mxu2 %v32_v15 }
  0x21   :  { %68 = vmatmul.f32.vlgmr.msra.gmra.mxu0 %v30_v16  ;;  %71 = vmatmul.f32.vlgmr.msra.gmra.mxu2 %v31_v17 }
  0x22   :  { %194 = vmatpush.msra.mxu1 %v167_v47  ;;  %250 = vmatpush.msra.mxu3 %v167_v47 }
  0x24   :  { %195 = vmatpush.msra.mxu1 %v166_v52  ;;  %251 = vmatpush.msra.mxu3 %v166_v52 }
  0x26   :  { %196 = vmatpush.msra.mxu1 %v165_v56  ;;  %252 = vmatpush.msra.mxu3 %v165_v56  ;;  %v254_v56 = vld [vmem:[%s436_s4] ss:$0 sm:$0xff] }
  0x9e   :  { %v69_v24 = vpop.f32.mrf.mxu0 }
  0x9f   :  { %v364_v26 = vadd.f32 %v253_v22, %v69_v24 }
  0xa1   :  { %v370_v28 = vmul.f32 0.70710677, %v364_v26  ;;  %v75_v47 = vmul.f32 0.5, %v364_v26 }
  0xa3   :  { %v79_v31 = vmul.f32 %v370_v28, %v370_v28 }
  0xa4   :  { %v72_v32 = vpop.f32.mrf.mxu2 }
  0xa5   :  { %v383_v34 = vmin.f32 %v79_v31, 16.0  ;;  %v385_v35 = vadd.f32 %v253_v22, %v72_v32 }
  0xa7   :  { %v81_v37 = vmul.f32 2.1237322e-06, %v383_v34  ;;  %v392_v38 = vmul.f32 0.70710677, %v385_v35  ;;  %v92_v40 = vmul.f32 3.8918573e-05, %v383_v34 }
  0xa9   :  { %v82_v41 = vadd.f32 0.00028619796, %v81_v37  ;;  %v119_v42 = vmul.f32 %v392_v38, %v392_v38  ;;  %v93_v44 = vadd.f32 0.001143296, %v92_v40 }
  0xab   :  { %v83_v45 = vmul.f32 %v82_v41, %v383_v34  ;;  %v120_v46 = vmin.f32 %v119_v42, 16.0  ;;  %v94_v48 = vmul.f32 %v93_v44, %v383_v34 }
  0xad   :  { %v121_v49 = vmul.f32 2.1237322e-06, %v120_v46  ;;  %v132_v50 = vmul.f32 3.8918573e-05, %v120_v46  ;;  %v84_v51 = vadd.f32 0.0036580483, %v83_v45 }
  0xae   :  { %v95_v53 = vadd.f32 0.014752088, %v94_v48 }
  0xaf   :  { %v122_v54 = vadd.f32 0.00028619796, %v121_v49  ;;  %v133_v55 = vadd.f32 0.001143296, %v132_v50  ;;  %v85_v60 = vmul.f32 %v84_v51, %v383_v34 }
  0xb0   :  { %v96_v57 = vmul.f32 %v95_v53, %v383_v34  ;;  %v76_v53 = vmul.f32 0.5, %v385_v35 }
  0xb1   :  { %v123_v58 = vmul.f32 %v122_v54, %v120_v46  ;;  %v134_v59 = vmul.f32 %v133_v55, %v120_v46  ;;  %v86_v2 = vadd.f32 0.05243302, %v85_v60 }
  0xb2   :  { %v97_v61 = vadd.f32 0.112945676, %v96_v57 }
  0xb3   :  { %v124_v62 = vadd.f32 0.0036580483, %v123_v58  ;;  %v135_v63 = vadd.f32 0.014752088, %v134_v59  ;;  %v87_v8 = vmul.f32 %v86_v2, %v383_v34 }
  0xb4   :  { %v98_v0 = vmul.f32 %v97_v61, %v383_v34 }
  0xb5   :  { %v136_v1 = vmul.f32 %v135_v63, %v120_v46  ;;  %v125_v4 = vmul.f32 %v124_v62, %v120_v46  ;;  %v88_v13 = vadd.f32 0.18741608, %v87_v8 }
  0xb6   :  { %v99_v3 = vadd.f32 0.4994258, %v98_v0 }
  0xb7   :  { %v137_v5 = vadd.f32 0.112945676, %v136_v1  ;;  %v126_v10 = vadd.f32 0.05243302, %v125_v4  ;;  %v89_v17 = vmul.f32 %v88_v13, %v383_v34 }
  0xb8   :  { %v100_v6 = vmul.f32 %v99_v3, %v383_v34 }
  0xb9   :  { %v138_v7 = vmul.f32 %v137_v5, %v120_v46  ;;  %v127_v14 = vmul.f32 %v126_v10, %v120_v46  ;;  %v90_v21 = vadd.f32 1.1283791, %v89_v17 }
  0xba   :  { %v101_v9 = vadd.f32 1.0, %v100_v6 }
  0xbb   :  { %v139_v11 = vadd.f32 0.4994258, %v138_v7  ;;  %v128_v18 = vadd.f32 0.18741608, %v127_v14  ;;  %v91_v31 = vmul.f32 %v90_v21, %v370_v28 }
  0xbc   :  { %255 = vrcp.f32 %v101_v9  ;;  %v113_v22 = vand.u32 2147483648, %v101_v9  ;;  %v111_v27 = vand.u32 2147483647, %v101_v9  ;;  %vm107_vm1 = vweird.f32 %v101_v9 }
  0xbd   :  { %v140_v12 = vmul.f32 %v139_v11, %v120_v46  ;;  %v129_v24 = vmul.f32 %v128_v18, %v120_v46 }
  0xbe   :  { %v114_v32 = vor.u32 1.1754944e-38, %v113_v22  ;;  %vm112_vm3 = vcmp.eq.f32.partialorder %v111_v27, 8.507059e+37 }
  0xbf   :  { %v141_v15 = vadd.f32 1.0, %v140_v12  ;;  %v130_v36 = vadd.f32 1.1283791, %v129_v24 }
  0xc1   :  { %257 = vrcp.f32 %v141_v15  ;;  %v153_v37 = vand.u32 2147483648, %v141_v15  ;;  %v151_v41 = vand.u32 2147483647, %v141_v15  ;;  %vm147_vm5 = vweird.f32 %v141_v15 }
  0xc2   :  { %v256_v16 = vpop.eup %255  ;;  %v131_v46 = vmul.f32 %v130_v36, %v392_v38 }
  0xc3   :  { %v103_v19 = vmul.f32 %v256_v16, %v101_v9  ;;  %vm108_vm0 = vweird.f32 %v256_v16  ;;  %v154_v45 = vor.u32 1.1754944e-38, %v153_v37  ;;  %vm152_vm7 = vcmp.eq.f32.partialorder %v151_v41, 8.507059e+37 }
  0xc4   :  { %vm109_vm2 = vmor %vm107_vm1, %vm108_vm0 }
  0xc5   :  { %v104_v20 = vsub.f32 1.0, %v103_v19 }
  0xc7   :  { %v258_v23 = vpop.eup %257  ;;  %v105_v25 = vmul.f32 %v256_v16, %v104_v20 }
  0xc8   :  { %v143_v29 = vmul.f32 %v258_v23, %v141_v15  ;;  %vm148_vm4 = vweird.f32 %v258_v23 }
  0xc9   :  { %v106_v30 = vadd.f32 %v256_v16, %v105_v25  ;;  %vm149_vm6 = vmor %vm147_vm5, %vm148_vm4 }
  0xca   :  { %v144_v33 = vsub.f32 1.0, %v143_v29 }
  0xcb   :  { %v110_v34 = vsel %vm109_vm2, %v256_v16, %v106_v30 }
  0xcc   :  { %v115_v39 = vsel %vm112_vm3, %v114_v32, %v110_v34  ;;  %v145_v40 = vmul.f32 %v258_v23, %v144_v33 }
  0xcd   :  { %v116_v42 = vmul.f32 %v115_v39, %v91_v31 }
  0xce   :  { %v146_v43 = vadd.f32 %v258_v23, %v145_v40 }
  0xcf   :  { %v219_v44 = vclamps-f32 %v116_v42, 1.0 }
  0xd0   :  { %v150_v28 = vsel %vm149_vm6, %v258_v23, %v146_v43 }
  0xd1   :  { %v159_v48 = vadd.f32 1.0, %v219_v44  ;;  %v155_v49 = vsel %vm152_vm7, %v154_v45, %v150_v28 }
  0xd2   :  { %v156_v50 = vmul.f32 %v155_v49, %v131_v46 }
  0xd3   :  { %v161_v51 = vmul.f32 %v159_v48, %v75_v47 }
  0xd4   :  { %v220_v52 = vclamps-f32 %v156_v50, 1.0 }
  0xd5   :  { %197 = vmatmul.f32.vlgmr.msra.gmra.mxu1 %v161_v51 }
  0xd6   :  { %v160_v54 = vadd.f32 1.0, %v220_v52 }
  0xd8   :  { %v162_v55 = vmul.f32 %v160_v54, %v76_v53 }
  0xda   :  { %200 = vmatmul.f32.vlgmr.msra.gmra.mxu3 %v162_v55 }
 0x152   :  { %v198_v38 = vpop.f32.mrf.mxu1 }
 0x153   :  { %v204_v57 = vadd.f32 %v254_v56, %v198_v38 }
 0x155   :  { %213 = vst [vmem:[%s438_s5] sm:$0xff] %v204_v57 }
 0x15d   :  { %v201_v26 = vpop.f32.mrf.mxu3 }
 0x15e   :  { %v205_v58 = vadd.f32 %v254_v56, %v201_v26 }
 0x160   :  { %214 = vst [vmem:[%s438_s5 + $0x8] sm:$0xff] %v205_v58 }

</bundles_post_ra>
